<compile_context>
chip_gen: v6e
topology: v6e:2x2x1
jax: 0.10.0
libtpu: 0.0.40
codegen_flags: <defaults>
</compile_context>

<pallas_src>
import functools

import jax
import jax.numpy as jnp
import numpy as np
from jax.experimental import pallas as pl
from jax.experimental.pallas import tpu as pltpu


def _block_kernel(x_ref, wlin_ref, blin_ref, wconv_ref, bconv_ref, out_ref, *,
                  kk, img_w):
    """One grid step == `bt` batch samples.

    x_ref:     (bt, C, H*W)      input tile, spatial flattened (input dtype)
    wlin_ref:  (C, C)   f32      linear weight, pre-transposed to (in, out)
    blin_ref:  (1, C)   f32      linear bias
    wconv_ref: (kk*kk, K*C, C)   conv weights regrouped per spatial tap
    bconv_ref: (K, C)   f32      conv biases
    out_ref:   (bt, C, H*W) f32  gated conv sum on the FULL spatial grid; the
                                 valid (md, md) window is sliced in the wrapper.
    """
    bt, C, HW = out_ref.shape
    K = bconv_ref.shape[0]
    KC = wconv_ref.shape[1]

    x = x_ref[...]                                            # (bt, C, HW)

    # ---- gate: AvgPool2d(ins) -> Linear -> ReLU, computed in f32 ----------
    pooled = jnp.mean(x.astype(jnp.float32), axis=-1)         # (bt, C)
    gate = jnp.dot(pooled, wlin_ref[...],
                   preferred_element_type=jnp.float32) + blin_ref[...]
    gate = jnp.maximum(gate, 0.0)                              # (bt, C)

    # ---- all K convolutions at once: kk*kk shifted-slice matmul accumulation
    #   tmp[b, k*C + o, j] = sum_{c,dy,dx} W[k,o,c,dy,dx] * x[b, c, j + dy*W + dx]
    # The left shift along the flattened-spatial lane axis is a slice+concat
    # (jnp.roll-style; pltpu.roll would also work).  Wrapped-around lanes only
    # pollute positions outside the valid window, which the wrapper slices off.
    tmp = None
    for dy in range(kk):
        for dx in range(kk):
            d = dy * img_w + dx
            xs = x if d == 0 else jnp.concatenate(
                [x[:, :, d:], x[:, :, :d]], axis=2)            # (bt, C, HW)
            w_d = jnp.broadcast_to(wconv_ref[dy * kk + dx], (bt, KC, C))
            term = jnp.einsum('boc,bcj->boj', w_d, xs,
                              preferred_element_type=jnp.float32)
            tmp = term if tmp is None else tmp + term          # (bt, K*C, HW)

    # ---- gated combine over the K conv branches (K VPU FMAs) + gated bias --
    b_eff = jnp.dot(gate[:, :K], bconv_ref[...],
                    preferred_element_type=jnp.float32)        # (bt, C)
    out = gate[:, 0:1, None] * tmp[:, 0:C, :]
    for k in range(1, K):
        out = out + gate[:, k:k + 1, None] * tmp[:, k * C:(k + 1) * C, :]
    out_ref[...] = (out + b_eff[:, :, None]).astype(out_ref.dtype)


def _pick_batch_tile(B, batch_tile):
    bt = max(1, min(int(batch_tile), int(B)))
    try:
        kind = jax.devices()[0].device_kind.lower()
    except Exception:  # pragma: no cover - defensive
        kind = ""
    # v7x has two TensorCores per chip: ensure the parallel grid has >= 2
    # steps when there is enough work to split.  Single-TC v5e/v6e prefer one
    # big tile (fewer grid-step overheads, bigger DMAs).
    if "v7" in kind and B >= 16:
        bt = min(bt, -(-B // 2))
    return bt


@functools.partial(jax.jit, static_argnames=("conv_kernal", "batch_tile"))
def block_forward(x, wlin, blin, wconv, bconv, *, conv_kernal, batch_tile=128):
    B, C, H, W = x.shape
    K = wconv.shape[0]
    kk = conv_kernal
    assert wconv.shape == (K, C, C, kk, kk)
    assert K <= C, "Block.forward requires K <= channels (a[:, k] indexing)"
    # Note: the PyTorch .view(B, -1, 3) additionally assumes channels == 3;
    # it is value-neutral either way, so we only require K <= C here.
    md = H - kk + 1
    HW = H * W
    KC = K * C

    # Tiny parameter re-layouts (done once by XLA, outside the kernel):
    #   wm[dy*kk + dx, k*C + o, c] = wconv[k, o, c, dy, dx]
    wm = jnp.transpose(wconv, (3, 4, 0, 1, 2)).reshape(kk * kk, KC, C)
    wm = wm.astype(x.dtype)               # MXU operand dtype follows X (bf16-friendly)
    wlin_t = wlin.T.astype(jnp.float32)   # (in, out)
    blin2 = blin.reshape(1, C).astype(jnp.float32)
    bconv2 = bconv.astype(jnp.float32)

    # The only large tensor streamed to the kernel: X with spatial flattened so
    # the lane axis is H*W (dense; 256 lanes for the usual 16x16 inputs).
    x2 = x.reshape(B, C, HW)

    bt = _pick_batch_tile(B, batch_tile)
    nb = pl.cdiv(B, bt)
    B_pad = nb * bt
    if B_pad != B:                         # pad X itself, not an inflated temp
        x2 = jnp.pad(x2, ((0, B_pad - B), (0, 0), (0, 0)))

    kernel = functools.partial(_block_kernel, kk=kk, img_w=W)
    out_full = pl.pallas_call(
        kernel,
        out_shape=jax.ShapeDtypeStruct((B_pad, C, HW), jnp.float32),
        grid=(nb,),
        in_specs=[
            pl.BlockSpec((bt, C, HW), lambda b: (b, 0, 0)),       # X tile
            pl.BlockSpec((C, C), lambda b: (0, 0)),               # linear weight
            pl.BlockSpec((1, C), lambda b: (0, 0)),               # linear bias
            pl.BlockSpec((kk * kk, KC, C), lambda b: (0, 0, 0)),  # conv weights
            pl.BlockSpec((K, C), lambda b: (0, 0)),               # conv biases
        ],
        out_specs=pl.BlockSpec((bt, C, HW), lambda b: (b, 0, 0)),
        compiler_params=pltpu.CompilerParams(
            dimension_semantics=("parallel",),
            vmem_limit_bytes=(48 * 1024 * 1024) if bt > 32 else None),
    )(x2, wlin_t, blin2, wm, bconv2)

    # Full-grid result -> valid VALID-conv window (cheap wrapper slice).
    return out_full.reshape(B_pad, C, H, W)[:B, :, :md, :md]


def block_reference(x, wlin, blin, wconv, bconv):
    """Pure-JAX reference matching PyTorch Block.forward (NCHW)."""
    B, C, H, W = x.shape
    K = wconv.shape[0]
    kk = wconv.shape[-1]
    pooled = jnp.mean(x, axis=(2, 3))                              # AvgPool2d(ins)
    gate = jnp.maximum(pooled @ wlin.T + blin, 0.0)                # (B, C)
    out = jnp.zeros((B, C, H - kk + 1, W - kk + 1), jnp.float32)
    for k in range(K):
        conv = jax.lax.conv_general_dilated(
            x, wconv[k], (1, 1), "VALID",
            dimension_numbers=("NCHW", "OIHW", "NCHW"),
            precision=jax.lax.Precision.HIGHEST)
        conv = conv + bconv[k][None, :, None, None]
        out = out + gate[:, k][:, None, None, None] * conv
    return out


if __name__ == "__main__":
    # channels=3 keeps the original .view(B, -1, 3) valid; K <= channels is
    # required by a[:, k] in the PyTorch forward.
    B, channels, K, ins, conv_kernal = 2, 3, 3, 16, 3
    md = ins - conv_kernal + 1

    key = jax.random.PRNGKey(0)
    kx, k1, k2, k3, k4 = jax.random.split(key, 5)
    x = jax.random.normal(kx, (B, channels, ins, ins), jnp.float32)
    wlin = 0.3 * jax.random.normal(k1, (channels, channels), jnp.float32)
    blin = 0.1 * jax.random.normal(k2, (channels,), jnp.float32)
    wconv = 0.2 * jax.random.normal(
        k3, (K, channels, channels, conv_kernal, conv_kernal), jnp.float32)
    bconv = 0.1 * jax.random.normal(k4, (K, channels), jnp.float32)

    ref = block_reference(x, wlin, blin, wconv, bconv)

    # f32 streamed path.
    out = jax.block_until_ready(
        block_forward(x, wlin, blin, wconv, bconv, conv_kernal=conv_kernal))
    assert out.shape == (B, channels, md, md)
    np.testing.assert_allclose(np.asarray(out), np.asarray(ref),
                               rtol=1e-2, atol=1e-2)

    # bf16 streamed path (halves the dominant HBM read; f32 accumulation).
    out_bf16 = jax.block_until_ready(
        block_forward(x.astype(jnp.bfloat16), wlin, blin, wconv, bconv,
                      conv_kernal=conv_kernal))
    np.testing.assert_allclose(np.asarray(out_bf16), np.asarray(ref),
                               rtol=3e-2, atol=3e-2)

    # Ragged-batch / multi-step grid path (B=12, batch_tile=8 -> grid=2, pad=4).
    x12 = jax.random.normal(kx, (12, channels, ins, ins), jnp.float32)
    out12 = jax.block_until_ready(
        block_forward(x12, wlin, blin, wconv, bconv, conv_kernal=conv_kernal,
                      batch_tile=8))
    ref12 = block_reference(x12, wlin, blin, wconv, bconv)
    np.testing.assert_allclose(np.asarray(out12), np.asarray(ref12),
                               rtol=1e-2, atol=1e-2)

    print("KERNEL_OK")
</pallas_src>

<mosaic_0001>
module attributes {stable_mosaic.version = 11 : i64} {
  func.func @_block_kernel(%arg0: i32, %arg1: memref<2x3x256xf32, #tpu.memory_space<vmem>>, %arg2: memref<3x3xf32, #tpu.memory_space<vmem>>, %arg3: memref<1x3xf32, #tpu.memory_space<vmem>>, %arg4: memref<9x9x3xf32, #tpu.memory_space<vmem>>, %arg5: memref<3x3xf32, #tpu.memory_space<vmem>>, %arg6: memref<2x3x256xf32, #tpu.memory_space<vmem>>) attributes {dimension_semantics = [#tpu.dimension_semantics<parallel>], iteration_bounds = array<i64: 1>, scalar_prefetch = 0 : i64, scratch_operands = 0 : i64, tpu.core_type = #tpu.core_type<tc>, window_params = [{transform_indices = @transform_0, window_bounds = array<i64: 2, 3, 256>}, {pipeline_mode = #tpu.pipeline_mode<synchronous>, transform_indices = @transform_1, window_bounds = array<i64: 3, 3>}, {pipeline_mode = #tpu.pipeline_mode<synchronous>, transform_indices = @transform_2, window_bounds = array<i64: 1, 3>}, {pipeline_mode = #tpu.pipeline_mode<synchronous>, transform_indices = @transform_3, window_bounds = array<i64: 9, 9, 3>}, {pipeline_mode = #tpu.pipeline_mode<synchronous>, transform_indices = @transform_4, window_bounds = array<i64: 3, 3>}, {transform_indices = @transform_5, window_bounds = array<i64: 2, 3, 256>}]} {
    %c0 = arith.constant 0 : index
    %c0_0 = arith.constant 0 : index
    %c0_1 = arith.constant 0 : index
    %0 = vector.load %arg1[%c0, %c0_0, %c0_1] : memref<2x3x256xf32, #tpu.memory_space<vmem>>, vector<2x3x256xf32>
    %cst = arith.constant dense<0.000000e+00> : vector<2x3xf32>
    %1 = vector.multi_reduction <add>, %0, %cst [2] : vector<2x3x256xf32> to vector<2x3xf32>
    %cst_2 = arith.constant 2.560000e+02 : f32
    %2 = vector.broadcast %cst_2 : f32 to vector<2x3xf32>
    %3 = arith.divf %1, %2 : vector<2x3xf32>
    %c0_3 = arith.constant 0 : index
    %c0_4 = arith.constant 0 : index
    %4 = vector.load %arg2[%c0_3, %c0_4] : memref<3x3xf32, #tpu.memory_space<vmem>>, vector<3x3xf32>
    %cst_5 = arith.constant dense<0.000000e+00> : vector<2x3xf32>
    %5 = tpu.matmul %3, %4, %cst_5 {dimension_numbers = #tpu.dot_dimension_numbers<[1], [0], [0], [1], [0, 0, 1, 1], [], []>} : vector<2x3xf32>, vector<3x3xf32>, vector<2x3xf32> -> vector<2x3xf32>
    %c0_6 = arith.constant 0 : index
    %c0_7 = arith.constant 0 : index
    %6 = vector.load %arg3[%c0_6, %c0_7] : memref<1x3xf32, #tpu.memory_space<vmem>>, vector<1x3xf32>
    %7 = vector.broadcast %6 : vector<1x3xf32> to vector<2x3xf32>
    %8 = arith.addf %5, %7 : vector<2x3xf32>
    %cst_8 = arith.constant 0.000000e+00 : f32
    %9 = vector.broadcast %cst_8 : f32 to vector<2x3xf32>
    %10 = arith.maximumf %8, %9 : vector<2x3xf32>
    %c0_9 = arith.constant 0 : index
    %c0_10 = arith.constant 0 : index
    %c0_11 = arith.constant 0 : index
    %11 = vector.load %arg4[%c0_9, %c0_10, %c0_11] : memref<9x9x3xf32, #tpu.memory_space<vmem>>, vector<1x9x3xf32>
    %12 = vector.shape_cast %11 : vector<1x9x3xf32> to vector<9x3xf32>
    %13 = vector.shape_cast %12 : vector<9x3xf32> to vector<1x9x3xf32>
    %14 = vector.broadcast %13 : vector<1x9x3xf32> to vector<2x9x3xf32>
    "tpu.trace_start"() <{level = 10 : i32, message = "boc,bcj->boj"}> : () -> ()
    %cst_12 = arith.constant dense<0.000000e+00> : vector<2x9x256xf32>
    %15 = tpu.matmul %14, %0, %cst_12 {dimension_numbers = #tpu.dot_dimension_numbers<[2], [1], [1], [2], [0, 0, 0, 1, 1, 2], [0], [0]>} : vector<2x9x3xf32>, vector<2x3x256xf32>, vector<2x9x256xf32> -> vector<2x9x256xf32>
    "tpu.trace_stop"() : () -> ()
    %16 = vector.extract_strided_slice %0 {offsets = [0, 0, 1], sizes = [2, 3, 255], strides = [1, 1, 1]} : vector<2x3x256xf32> to vector<2x3x255xf32>
    %17 = vector.extract_strided_slice %0 {offsets = [0, 0, 0], sizes = [2, 3, 1], strides = [1, 1, 1]} : vector<2x3x256xf32> to vector<2x3x1xf32>
    %18 = tpu.concatenate %16, %17 in 2 : vector<2x3x255xf32>, vector<2x3x1xf32> -> vector<2x3x256xf32>
    %c1 = arith.constant 1 : index
    %c0_13 = arith.constant 0 : index
    %c0_14 = arith.constant 0 : index
    %19 = vector.load %arg4[%c1, %c0_13, %c0_14] : memref<9x9x3xf32, #tpu.memory_space<vmem>>, vector<1x9x3xf32>
    %20 = vector.shape_cast %19 : vector<1x9x3xf32> to vector<9x3xf32>
    %21 = vector.shape_cast %20 : vector<9x3xf32> to vector<1x9x3xf32>
    %22 = vector.broadcast %21 : vector<1x9x3xf32> to vector<2x9x3xf32>
    "tpu.trace_start"() <{level = 10 : i32, message = "boc,bcj->boj"}> : () -> ()
    %cst_15 = arith.constant dense<0.000000e+00> : vector<2x9x256xf32>
    %23 = tpu.matmul %22, %18, %cst_15 {dimension_numbers = #tpu.dot_dimension_numbers<[2], [1], [1], [2], [0, 0, 0, 1, 1, 2], [0], [0]>} : vector<2x9x3xf32>, vector<2x3x256xf32>, vector<2x9x256xf32> -> vector<2x9x256xf32>
    "tpu.trace_stop"() : () -> ()
    %24 = arith.addf %15, %23 : vector<2x9x256xf32>
    %25 = vector.extract_strided_slice %0 {offsets = [0, 0, 2], sizes = [2, 3, 254], strides = [1, 1, 1]} : vector<2x3x256xf32> to vector<2x3x254xf32>
    %26 = vector.extract_strided_slice %0 {offsets = [0, 0, 0], sizes = [2, 3, 2], strides = [1, 1, 1]} : vector<2x3x256xf32> to vector<2x3x2xf32>
    %27 = tpu.concatenate %25, %26 in 2 : vector<2x3x254xf32>, vector<2x3x2xf32> -> vector<2x3x256xf32>
    %c2 = arith.constant 2 : index
    %c0_16 = arith.constant 0 : index
    %c0_17 = arith.constant 0 : index
    %28 = vector.load %arg4[%c2, %c0_16, %c0_17] : memref<9x9x3xf32, #tpu.memory_space<vmem>>, vector<1x9x3xf32>
    %29 = vector.shape_cast %28 : vector<1x9x3xf32> to vector<9x3xf32>
    %30 = vector.shape_cast %29 : vector<9x3xf32> to vector<1x9x3xf32>
    %31 = vector.broadcast %30 : vector<1x9x3xf32> to vector<2x9x3xf32>
    "tpu.trace_start"() <{level = 10 : i32, message = "boc,bcj->boj"}> : () -> ()
    %cst_18 = arith.constant dense<0.000000e+00> : vector<2x9x256xf32>
    %32 = tpu.matmul %31, %27, %cst_18 {dimension_numbers = #tpu.dot_dimension_numbers<[2], [1], [1], [2], [0, 0, 0, 1, 1, 2], [0], [0]>} : vector<2x9x3xf32>, vector<2x3x256xf32>, vector<2x9x256xf32> -> vector<2x9x256xf32>
    "tpu.trace_stop"() : () -> ()
    %33 = arith.addf %24, %32 : vector<2x9x256xf32>
    %34 = vector.extract_strided_slice %0 {offsets = [0, 0, 16], sizes = [2, 3, 240], strides = [1, 1, 1]} : vector<2x3x256xf32> to vector<2x3x240xf32>
    %35 = vector.extract_strided_slice %0 {offsets = [0, 0, 0], sizes = [2, 3, 16], strides = [1, 1, 1]} : vector<2x3x256xf32> to vector<2x3x16xf32>
    %36 = tpu.concatenate %34, %35 in 2 : vector<2x3x240xf32>, vector<2x3x16xf32> -> vector<2x3x256xf32>
    %c3 = arith.constant 3 : index
    %c0_19 = arith.constant 0 : index
    %c0_20 = arith.constant 0 : index
    %37 = vector.load %arg4[%c3, %c0_19, %c0_20] : memref<9x9x3xf32, #tpu.memory_space<vmem>>, vector<1x9x3xf32>
    %38 = vector.shape_cast %37 : vector<1x9x3xf32> to vector<9x3xf32>
    %39 = vector.shape_cast %38 : vector<9x3xf32> to vector<1x9x3xf32>
    %40 = vector.broadcast %39 : vector<1x9x3xf32> to vector<2x9x3xf32>
    "tpu.trace_start"() <{level = 10 : i32, message = "boc,bcj->boj"}> : () -> ()
    %cst_21 = arith.constant dense<0.000000e+00> : vector<2x9x256xf32>
    %41 = tpu.matmul %40, %36, %cst_21 {dimension_numbers = #tpu.dot_dimension_numbers<[2], [1], [1], [2], [0, 0, 0, 1, 1, 2], [0], [0]>} : vector<2x9x3xf32>, vector<2x3x256xf32>, vector<2x9x256xf32> -> vector<2x9x256xf32>
    "tpu.trace_stop"() : () -> ()
    %42 = arith.addf %33, %41 : vector<2x9x256xf32>
    %43 = vector.extract_strided_slice %0 {offsets = [0, 0, 17], sizes = [2, 3, 239], strides = [1, 1, 1]} : vector<2x3x256xf32> to vector<2x3x239xf32>
    %44 = vector.extract_strided_slice %0 {offsets = [0, 0, 0], sizes = [2, 3, 17], strides = [1, 1, 1]} : vector<2x3x256xf32> to vector<2x3x17xf32>
    %45 = tpu.concatenate %43, %44 in 2 : vector<2x3x239xf32>, vector<2x3x17xf32> -> vector<2x3x256xf32>
    %c4 = arith.constant 4 : index
    %c0_22 = arith.constant 0 : index
    %c0_23 = arith.constant 0 : index
    %46 = vector.load %arg4[%c4, %c0_22, %c0_23] : memref<9x9x3xf32, #tpu.memory_space<vmem>>, vector<1x9x3xf32>
    %47 = vector.shape_cast %46 : vector<1x9x3xf32> to vector<9x3xf32>
    %48 = vector.shape_cast %47 : vector<9x3xf32> to vector<1x9x3xf32>
    %49 = vector.broadcast %48 : vector<1x9x3xf32> to vector<2x9x3xf32>
    "tpu.trace_start"() <{level = 10 : i32, message = "boc,bcj->boj"}> : () -> ()
    %cst_24 = arith.constant dense<0.000000e+00> : vector<2x9x256xf32>
    %50 = tpu.matmul %49, %45, %cst_24 {dimension_numbers = #tpu.dot_dimension_numbers<[2], [1], [1], [2], [0, 0, 0, 1, 1, 2], [0], [0]>} : vector<2x9x3xf32>, vector<2x3x256xf32>, vector<2x9x256xf32> -> vector<2x9x256xf32>
    "tpu.trace_stop"() : () -> ()
    %51 = arith.addf %42, %50 : vector<2x9x256xf32>
    %52 = vector.extract_strided_slice %0 {offsets = [0, 0, 18], sizes = [2, 3, 238], strides = [1, 1, 1]} : vector<2x3x256xf32> to vector<2x3x238xf32>
    %53 = vector.extract_strided_slice %0 {offsets = [0, 0, 0], sizes = [2, 3, 18], strides = [1, 1, 1]} : vector<2x3x256xf32> to vector<2x3x18xf32>
    %54 = tpu.concatenate %52, %53 in 2 : vector<2x3x238xf32>, vector<2x3x18xf32> -> vector<2x3x256xf32>
    %c5 = arith.constant 5 : index
    %c0_25 = arith.constant 0 : index
    %c0_26 = arith.constant 0 : index
    %55 = vector.load %arg4[%c5, %c0_25, %c0_26] : memref<9x9x3xf32, #tpu.memory_space<vmem>>, vector<1x9x3xf32>
    %56 = vector.shape_cast %55 : vector<1x9x3xf32> to vector<9x3xf32>
    %57 = vector.shape_cast %56 : vector<9x3xf32> to vector<1x9x3xf32>
    %58 = vector.broadcast %57 : vector<1x9x3xf32> to vector<2x9x3xf32>
    "tpu.trace_start"() <{level = 10 : i32, message = "boc,bcj->boj"}> : () -> ()
    %cst_27 = arith.constant dense<0.000000e+00> : vector<2x9x256xf32>
    %59 = tpu.matmul %58, %54, %cst_27 {dimension_numbers = #tpu.dot_dimension_numbers<[2], [1], [1], [2], [0, 0, 0, 1, 1, 2], [0], [0]>} : vector<2x9x3xf32>, vector<2x3x256xf32>, vector<2x9x256xf32> -> vector<2x9x256xf32>
    "tpu.trace_stop"() : () -> ()
    %60 = arith.addf %51, %59 : vector<2x9x256xf32>
    %61 = vector.extract_strided_slice %0 {offsets = [0, 0, 32], sizes = [2, 3, 224], strides = [1, 1, 1]} : vector<2x3x256xf32> to vector<2x3x224xf32>
    %62 = vector.extract_strided_slice %0 {offsets = [0, 0, 0], sizes = [2, 3, 32], strides = [1, 1, 1]} : vector<2x3x256xf32> to vector<2x3x32xf32>
    %63 = tpu.concatenate %61, %62 in 2 : vector<2x3x224xf32>, vector<2x3x32xf32> -> vector<2x3x256xf32>
    %c6 = arith.constant 6 : index
    %c0_28 = arith.constant 0 : index
    %c0_29 = arith.constant 0 : index
    %64 = vector.load %arg4[%c6, %c0_28, %c0_29] : memref<9x9x3xf32, #tpu.memory_space<vmem>>, vector<1x9x3xf32>
    %65 = vector.shape_cast %64 : vector<1x9x3xf32> to vector<9x3xf32>
    %66 = vector.shape_cast %65 : vector<9x3xf32> to vector<1x9x3xf32>
    %67 = vector.broadcast %66 : vector<1x9x3xf32> to vector<2x9x3xf32>
    "tpu.trace_start"() <{level = 10 : i32, message = "boc,bcj->boj"}> : () -> ()
    %cst_30 = arith.constant dense<0.000000e+00> : vector<2x9x256xf32>
    %68 = tpu.matmul %67, %63, %cst_30 {dimension_numbers = #tpu.dot_dimension_numbers<[2], [1], [1], [2], [0, 0, 0, 1, 1, 2], [0], [0]>} : vector<2x9x3xf32>, vector<2x3x256xf32>, vector<2x9x256xf32> -> vector<2x9x256xf32>
    "tpu.trace_stop"() : () -> ()
    %69 = arith.addf %60, %68 : vector<2x9x256xf32>
    %70 = vector.extract_strided_slice %0 {offsets = [0, 0, 33], sizes = [2, 3, 223], strides = [1, 1, 1]} : vector<2x3x256xf32> to vector<2x3x223xf32>
    %71 = vector.extract_strided_slice %0 {offsets = [0, 0, 0], sizes = [2, 3, 33], strides = [1, 1, 1]} : vector<2x3x256xf32> to vector<2x3x33xf32>
    %72 = tpu.concatenate %70, %71 in 2 : vector<2x3x223xf32>, vector<2x3x33xf32> -> vector<2x3x256xf32>
    %c7 = arith.constant 7 : index
    %c0_31 = arith.constant 0 : index
    %c0_32 = arith.constant 0 : index
    %73 = vector.load %arg4[%c7, %c0_31, %c0_32] : memref<9x9x3xf32, #tpu.memory_space<vmem>>, vector<1x9x3xf32>
    %74 = vector.shape_cast %73 : vector<1x9x3xf32> to vector<9x3xf32>
    %75 = vector.shape_cast %74 : vector<9x3xf32> to vector<1x9x3xf32>
    %76 = vector.broadcast %75 : vector<1x9x3xf32> to vector<2x9x3xf32>
    "tpu.trace_start"() <{level = 10 : i32, message = "boc,bcj->boj"}> : () -> ()
    %cst_33 = arith.constant dense<0.000000e+00> : vector<2x9x256xf32>
    %77 = tpu.matmul %76, %72, %cst_33 {dimension_numbers = #tpu.dot_dimension_numbers<[2], [1], [1], [2], [0, 0, 0, 1, 1, 2], [0], [0]>} : vector<2x9x3xf32>, vector<2x3x256xf32>, vector<2x9x256xf32> -> vector<2x9x256xf32>
    "tpu.trace_stop"() : () -> ()
    %78 = arith.addf %69, %77 : vector<2x9x256xf32>
    %79 = vector.extract_strided_slice %0 {offsets = [0, 0, 34], sizes = [2, 3, 222], strides = [1, 1, 1]} : vector<2x3x256xf32> to vector<2x3x222xf32>
    %80 = vector.extract_strided_slice %0 {offsets = [0, 0, 0], sizes = [2, 3, 34], strides = [1, 1, 1]} : vector<2x3x256xf32> to vector<2x3x34xf32>
    %81 = tpu.concatenate %79, %80 in 2 : vector<2x3x222xf32>, vector<2x3x34xf32> -> vector<2x3x256xf32>
    %c8 = arith.constant 8 : index
    %c0_34 = arith.constant 0 : index
    %c0_35 = arith.constant 0 : index
    %82 = vector.load %arg4[%c8, %c0_34, %c0_35] : memref<9x9x3xf32, #tpu.memory_space<vmem>>, vector<1x9x3xf32>
    %83 = vector.shape_cast %82 : vector<1x9x3xf32> to vector<9x3xf32>
    %84 = vector.shape_cast %83 : vector<9x3xf32> to vector<1x9x3xf32>
    %85 = vector.broadcast %84 : vector<1x9x3xf32> to vector<2x9x3xf32>
    "tpu.trace_start"() <{level = 10 : i32, message = "boc,bcj->boj"}> : () -> ()
    %cst_36 = arith.constant dense<0.000000e+00> : vector<2x9x256xf32>
    %86 = tpu.matmul %85, %81, %cst_36 {dimension_numbers = #tpu.dot_dimension_numbers<[2], [1], [1], [2], [0, 0, 0, 1, 1, 2], [0], [0]>} : vector<2x9x3xf32>, vector<2x3x256xf32>, vector<2x9x256xf32> -> vector<2x9x256xf32>
    "tpu.trace_stop"() : () -> ()
    %87 = arith.addf %78, %86 : vector<2x9x256xf32>
    %c0_37 = arith.constant 0 : index
    %c0_38 = arith.constant 0 : index
    %88 = vector.load %arg5[%c0_37, %c0_38] : memref<3x3xf32, #tpu.memory_space<vmem>>, vector<3x3xf32>
    %cst_39 = arith.constant dense<0.000000e+00> : vector<2x3xf32>
    %89 = tpu.matmul %10, %88, %cst_39 {dimension_numbers = #tpu.dot_dimension_numbers<[1], [0], [0], [1], [0, 0, 1, 1], [], []>} : vector<2x3xf32>, vector<3x3xf32>, vector<2x3xf32> -> vector<2x3xf32>
    %90 = vector.extract_strided_slice %10 {offsets = [0, 0], sizes = [2, 1], strides = [1, 1]} : vector<2x3xf32> to vector<2x1xf32>
    %91 = vector.shape_cast %90 : vector<2x1xf32> to vector<2x1x1xf32>
    %92 = vector.extract_strided_slice %87 {offsets = [0, 0, 0], sizes = [2, 3, 256], strides = [1, 1, 1]} : vector<2x9x256xf32> to vector<2x3x256xf32>
    %93 = vector.broadcast %91 : vector<2x1x1xf32> to vector<2x3x256xf32>
    %94 = arith.mulf %93, %92 : vector<2x3x256xf32>
    %95 = vector.extract_strided_slice %10 {offsets = [0, 1], sizes = [2, 1], strides = [1, 1]} : vector<2x3xf32> to vector<2x1xf32>
    %96 = vector.shape_cast %95 : vector<2x1xf32> to vector<2x1x1xf32>
    %97 = vector.extract_strided_slice %87 {offsets = [0, 3, 0], sizes = [2, 3, 256], strides = [1, 1, 1]} : vector<2x9x256xf32> to vector<2x3x256xf32>
    %98 = vector.broadcast %96 : vector<2x1x1xf32> to vector<2x3x256xf32>
    %99 = arith.mulf %98, %97 : vector<2x3x256xf32>
    %100 = arith.addf %94, %99 : vector<2x3x256xf32>
    %101 = vector.extract_strided_slice %10 {offsets = [0, 2], sizes = [2, 1], strides = [1, 1]} : vector<2x3xf32> to vector<2x1xf32>
    %102 = vector.shape_cast %101 : vector<2x1xf32> to vector<2x1x1xf32>
    %103 = vector.extract_strided_slice %87 {offsets = [0, 6, 0], sizes = [2, 3, 256], strides = [1, 1, 1]} : vector<2x9x256xf32> to vector<2x3x256xf32>
    %104 = vector.broadcast %102 : vector<2x1x1xf32> to vector<2x3x256xf32>
    %105 = arith.mulf %104, %103 : vector<2x3x256xf32>
    %106 = arith.addf %100, %105 : vector<2x3x256xf32>
    %107 = vector.shape_cast %89 : vector<2x3xf32> to vector<2x3x1xf32>
    %108 = vector.broadcast %107 : vector<2x3x1xf32> to vector<2x3x256xf32>
    %109 = arith.addf %106, %108 : vector<2x3x256xf32>
    %c0_40 = arith.constant 0 : index
    %c0_41 = arith.constant 0 : index
    %c0_42 = arith.constant 0 : index
    %110 = vector.load %arg6[%c0_40, %c0_41, %c0_42] : memref<2x3x256xf32, #tpu.memory_space<vmem>>, vector<2x3x256xf32>
    tpu.vector_store %arg6[%c0_40, %c0_41, %c0_42], %109 {strides = array<i32>} : memref<2x3x256xf32, #tpu.memory_space<vmem>>, vector<2x3x256xf32>,
    return
  }
  func.func @transform_0(%arg0: i32) -> (i32, i32, i32) {
    %c0_i32 = arith.constant 0 : i32
    %c0_i32_0 = arith.constant 0 : i32
    %c0_i32_1 = arith.constant 0 : i32
    return %arg0, %c0_i32, %c0_i32_0 : i32, i32, i32
  }
  func.func @transform_1(%arg0: i32) -> (i32, i32) {
    %c0_i32 = arith.constant 0 : i32
    %c0_i32_0 = arith.constant 0 : i32
    %c0_i32_1 = arith.constant 0 : i32
    return %c0_i32, %c0_i32_0 : i32, i32
  }
  func.func @transform_2(%arg0: i32) -> (i32, i32) {
    %c0_i32 = arith.constant 0 : i32
    %c0_i32_0 = arith.constant 0 : i32
    %c0_i32_1 = arith.constant 0 : i32
    return %c0_i32, %c0_i32_0 : i32, i32
  }
  func.func @transform_3(%arg0: i32) -> (i32, i32, i32) {
    %c0_i32 = arith.constant 0 : i32
    %c0_i32_0 = arith.constant 0 : i32
    %c0_i32_1 = arith.constant 0 : i32
    %c0_i32_2 = arith.constant 0 : i32
    return %c0_i32, %c0_i32_0, %c0_i32_1 : i32, i32, i32
  }
  func.func @transform_4(%arg0: i32) -> (i32, i32) {
    %c0_i32 = arith.constant 0 : i32
    %c0_i32_0 = arith.constant 0 : i32
    %c0_i32_1 = arith.constant 0 : i32
    return %c0_i32, %c0_i32_0 : i32, i32
  }
  func.func @transform_5(%arg0: i32) -> (i32, i32, i32) {
    %c0_i32 = arith.constant 0 : i32
    %c0_i32_0 = arith.constant 0 : i32
    %c0_i32_1 = arith.constant 0 : i32
    return %arg0, %c0_i32, %c0_i32_0 : i32, i32, i32
  }
}

</mosaic_0001>

<bundles_post_ra>
// kernel: block_forward.1
= control target key start
LH: loop header
LB: loop body
LE: loop exit
PB: predicated region body
PF: predicated region fallthrough
CT: control target
= control target key end

     0   :  { %vm28_vm0 = vcmask 1042432   ;;  %s2240_s22 = smov 127   ;;  %s2242_s23 = smov 112   ;;  %v2244_v10 = vmov 0.0   ;;  %vm2245_vm1 = vmmov 0   ;;  %vm151_vm2 = vcmask 1039360   ;;  %s2674_s0 = inlined_call_operand.vmem [shape: f32[2,3,256], index: 0, kind: input, shape index: {}]   ;;  %s2675_s1 = inlined_call_operand.vmem [shape: f32[3,3], index: 1, kind: input, shape index: {}]   ;;  %s2676_s3 = inlined_call_operand.vmem [shape: f32[9,9,3], index: 3, kind: input, shape index: {}]   ;;  %s2677_s4 = inlined_call_operand.vmem [shape: f32[3,3], index: 4, kind: input, shape index: {}]   ;;  %s2678_s2 = inlined_call_operand.vmem [shape: f32[1,3], index: 2, kind: input, shape index: {}]   ;;  %s2679_s5 = inlined_call_operand.vmem [shape: f32[2,3,256], index: 5, kind: output, shape index: {}]  }
   0x1   :  { %v2287_v0 = vld [vmem:[%s2674_s0] sm:$0x77]  ;;  %v2292_v1 = vld [vmem:[%s2674_s0 + $0x8] sm:$0x77]  ;;  %s2241_s0 = smov 126   ;;  %s2243_s24 = smov 111   ;;  %2208 = vmatprep.subr.mxu0 %v2244_v10  ;;  %2210 = vmatprep.mubr.msk.f32.mxu0 %vm2245_vm1, %v2244_v10  ;;  %v52_v24 = vlaneseq }
   0x2   :  { %v2296_v2 = vcombine.high %v2287_v0, %v2287_v0  ;;  %v29_v3 = vsel %vm28_vm0, %v2287_v0, 0.0  ;;  %v2302_v4 = vcombine.high %v2292_v1, %v2292_v1  ;;  %143 = vrot.lane.b32.xlu1 %v2287_v0, %s2240_s22  ;;  %v34_v6 = vsel %vm28_vm0, %v2292_v1, 0.0  ;;  %v42_v11 = vld [vmem:[%s2675_s1] sm:$0x7]  ;;  %238 = vmatprep.mubr.f32.mxu1 %v2244_v10  ;;  %s2246_s27 = smov 110   ;;  %s2247_s28 = smov 96  }
   0x3   :  { %2209 = vmatpush3.msk.msra.mxu0 %vm28_vm0, %v42_v11  ;;  %s2248_s1 = smov 95   ;;  %s2249_s29 = smov 94   ;;  %v2371_v16 = vld [vmem:[%s2676_s3 + $0x10] sm:$0xff]  ;;  %vm64_vm3 = vcmask 23552   ;;  %v2383_v18 = vld [vmem:[%s2676_s3 + $0x18] sm:$0x1] }
   0x4   :  { %v30_v5 = vsel %vm28_vm0, %v2296_v2, 0.0  ;;  %v35_v7 = vsel %vm28_vm0, %v2302_v4, 0.0  ;;  %v2393_v20 = vld [vmem:[%s2676_s3] sm:$0xff]  ;;  %v2401_v22 = vld [vmem:[%s2676_s3 + $0x8] sm:$0x1]  ;;  %v53_v26 = vand.u32 127, %v52_v24 }
   0x5   :  { %v31_v8 = vadd.f32 %v30_v5, %v29_v3  ;;  %v36_v9 = vadd.f32 %v35_v7, %v34_v6  ;;  %v2406_v27 = vshrl.u32 %v52_v24, 7  ;;  %vm62_vm4 = vcmask 1041409   ;;  %v2417_v42 = vld [vmem:[%s2676_s3 + $0x20] sm:$0xff]  ;;  %v2432_v46 = vld [vmem:[%s2676_s3 + $0x28] sm:$0x1]  ;;  %v2442_v49 = vld [vmem:[%s2676_s3 + $0x30] sm:$0xff] }
   0x6   :  { %145 = vrot.lane.b32.xlu1 %v2296_v2, %s2240_s22  ;;  %vm707_vm5 = vcmask 916480   ;;  %vm509_vm6 = vcmask 1031168   ;;  %vm905_vm7 = vcmask 908288   ;;  %vm1103_vm8 = vcmask 900096   ;;  %v2460_v56 = vld [vmem:[%s2676_s3 + $0x38] sm:$0x1] }
   0x7   :  { %32 = vadd.xlane.f32.xlu0 %v31_v8  ;;  %v56_v30 = vsub.s32 %v53_v26, %v2406_v27  ;;  %vm1301_vm9 = vcmask 785408   ;;  %v2477_v59 = vld [vmem:[%s2676_s3 + $0x40] sm:$0xff]  ;;  %vm1499_vm10 = vcmask 777216   ;;  %v2510_v5 = vld [vmem:[%s2676_s3 + $0x50] sm:$0xff]  ;;  %vm1697_vm11 = vcmask 769024  }
   0x8   :  { %v2182_v24 = vld [vmem:[%s2676_s3 + $0x70] sm:$0xff]  ;;  %vm2058_vm12 = vcmask 1041408  }
   0xa   :  { %503 = vrot.lane.b32.xlu1 %v2296_v2, %s2241_s0 }
   0xb   :  { %37 = vadd.xlane.f32.xlu0 %v36_v9 }
   0xe   :  { %699 = vrot.lane.b32.xlu1 %v2287_v0, %s2242_s23 }
  0x12   :  { %701 = vrot.lane.b32.xlu1 %v2296_v2, %s2242_s23 }
  0x16   :  { %897 = vrot.lane.b32.xlu1 %v2287_v0, %s2243_s24 }
  0x1a   :  { %899 = vrot.lane.b32.xlu1 %v2296_v2, %s2243_s24 }
  0x1e   :  { %1095 = vrot.lane.b32.xlu1 %v2287_v0, %s2246_s27 }
  0x21   :  { %501 = vrot.lane.b32.xlu0 %v2287_v0, %s2241_s0 }
  0x22   :  { %1293 = vrot.lane.b32.xlu1 %v2287_v0, %s2247_s28 }
  0x25   :  { %1097 = vrot.lane.b32.xlu0 %v2296_v2, %s2246_s27 }
  0x26   :  { %147 = vrot.lane.b32.xlu1 %v2292_v1, %s2240_s22 }
  0x29   :  { %1295 = vrot.lane.b32.xlu0 %v2296_v2, %s2247_s28 }
  0x2a   :  { %1491 = vrot.lane.b32.xlu1 %v2287_v0, %s2248_s1 }
  0x2d   :  { %149 = vrot.lane.b32.xlu0 %v2302_v4, %s2240_s22 }
  0x2e   :  { %1689 = vrot.lane.b32.xlu1 %v2287_v0, %s2249_s29 }
  0x31   :  { %1493 = vrot.lane.b32.xlu0 %v2296_v2, %s2248_s1 }
  0x32   :  { %505 = vrot.lane.b32.xlu1 %v2292_v1, %s2241_s0 }
  0x35   :  { %1691 = vrot.lane.b32.xlu0 %v2296_v2, %s2249_s29 }
  0x36   :  { %703 = vrot.lane.b32.xlu1 %v2292_v1, %s2242_s23 }
  0x39   :  { %507 = vrot.lane.b32.xlu0 %v2302_v4, %s2241_s0 }
  0x3a   :  { %901 = vrot.lane.b32.xlu1 %v2292_v1, %s2243_s24 }
  0x3d   :  { %705 = vrot.lane.b32.xlu0 %v2302_v4, %s2242_s23 }
  0x3e   :  { %1099 = vrot.lane.b32.xlu1 %v2292_v1, %s2246_s27 }
  0x41   :  { %903 = vrot.lane.b32.xlu0 %v2302_v4, %s2243_s24 }
  0x42   :  { %1297 = vrot.lane.b32.xlu1 %v2292_v1, %s2247_s28 }
  0x45   :  { %1101 = vrot.lane.b32.xlu0 %v2302_v4, %s2246_s27 }
  0x46   :  { %1495 = vrot.lane.b32.xlu1 %v2292_v1, %s2248_s1 }
  0x49   :  { %1299 = vrot.lane.b32.xlu0 %v2302_v4, %s2247_s28 }
  0x4a   :  { %1693 = vrot.lane.b32.xlu1 %v2292_v1, %s2249_s29 }
  0x4d   :  { %1497 = vrot.lane.b32.xlu0 %v2302_v4, %s2248_s1 }
  0x51   :  { %1695 = vrot.lane.b32.xlu0 %v2302_v4, %s2249_s29 }
  0x74   :  { %v144_v12 = vpop.permute.xlu1 %143 }
  0x78   :  { %v146_v13 = vpop.permute.xlu1 %145 }
  0x79   :  { %v158_v14 = vsel %vm151_vm2, %v146_v13, %v144_v12  ;;  %v152_v15 = vsel %vm151_vm2, %v144_v12, %v146_v13  ;;  %v2528_v13 = vld [vmem:[%s2676_s3 + $0x58] sm:$0x1] }
  0x7a   :  { %2116 = vmatprep.subr.msk.mxu1 %vm28_vm0, %v158_v14 }
  0x7b   :  { %2117 = vmatpush1.msk.msra.mxu1 %vm28_vm0, %v152_v15 }
  0x7c   :  { %v504_v17 = vpop.permute.xlu1 %503  ;;  %2118 = vmatmul.mubr.msk.f32.vlgmr.msra.gmra.mxu1 %vm64_vm3, %v2371_v16  ;;  %2124 = vmatprep.subr.msk.mxu1 %vm28_vm0, %v2296_v2 }
  0x7d   :  { %244 = vmatprep.mubr.f32.mxu1 %v2244_v10  ;;  %2125 = vmatpush1.msk.msra.mxu1 %vm28_vm0, %v2287_v0  ;;  %v2493_v0 = vld [vmem:[%s2676_s3 + $0x48] sm:$0x1] }
  0x80   :  { %v700_v19 = vpop.permute.xlu1 %699  ;;  %2119 = vmatmul.mubr.msk.f32.gmra.mxu1 %vm64_vm3, %v2383_v18 }
  0x81   :  { %407 = vmatprep.mubr.f32.mxu1 %v2244_v10 }
  0x84   :  { %v702_v21 = vpop.permute.xlu1 %701  ;;  %2126 = vmatmul.mubr.msk.f32.vlgmr.msra.gmra.mxu1 %vm64_vm3, %v2393_v20 }
  0x85   :  { %413 = vmatprep.mubr.f32.mxu1 %v2244_v10  ;;  %v714_v39 = vsel %vm707_vm5, %v702_v21, %v700_v19  ;;  %v708_v43 = vsel %vm707_vm5, %v700_v19, %v702_v21 }
  0x88   :  { %v898_v23 = vpop.permute.xlu1 %897  ;;  %2127 = vmatmul.mubr.msk.f32.gmra.mxu1 %vm64_vm3, %v2401_v22 }
  0x89   :  { %596 = vmatprep.mubr.f32.mxu1 %v2244_v10 }
  0x8c   :  { %v900_v25 = vpop.permute.xlu1 %899 }
  0x8d   :  { %v912_v44 = vsel %vm905_vm7, %v900_v25, %v898_v23  ;;  %v906_v50 = vsel %vm905_vm7, %v898_v23, %v900_v25  ;;  %v2173_v23 = vld [vmem:[%s2676_s3 + $0x68] sm:$0x1] }
  0x90   :  { %v33_v28 = vpop.xlane.xlu0 %32  ;;  %v1096_v29 = vpop.permute.xlu1 %1095 }
  0x91   :  { %v40_v31 = vmul.f32 0.00390625, %v33_v28 }
  0x93   :  { %v57_v34 = vrot.slane %v40_v31, %v56_v30  ;;  %v2183_v31 = vld [vmem:[%s2676_s3 + $0x78] sm:$0x1] }
  0x94   :  { %v38_v32 = vpop.xlane.xlu0 %37  ;;  %v2409_v37 = vpop.permute.xlu1 %1293 }
  0x95   :  { %v41_v33 = vmul.f32 0.00390625, %v38_v32  ;;  %v2192_v32 = vld [vmem:[%s2676_s3 + $0x80] sm:$0xff] }
  0x97   :  { %v61_v35 = vrot.slane %v41_v33, %v56_v30 }
  0x98   :  { %v502_v36 = vpop.permute.xlu0 %501  ;;  %v148_v47 = vpop.permute.xlu1 %147 }
  0x99   :  { %v63_v38 = vsel %vm62_vm4, %v61_v35, %v57_v34  ;;  %v510_v40 = vsel %vm509_vm6, %v502_v36, %v504_v17  ;;  %v516_v41 = vsel %vm509_vm6, %v504_v17, %v502_v36  ;;  %v1887_v35 = vld [vmem:[%s2677_s4] sm:$0x7] }
  0x9a   :  { %2211 = vmatmul.mubr.msk.f32.vlgmr.msra.gmra.mxu0 %vm64_vm3, %v63_v38  ;;  %2134 = vmatprep.subr.msk.mxu1 %vm28_vm0, %v516_v41  ;;  %v2193_v38 = vld [vmem:[%s2676_s3 + $0x88] sm:$0x1] }
  0x9b   :  { %320 = vmatprep.mubr.f32.mxu0 %v2244_v10  ;;  %2135 = vmatpush1.msk.msra.mxu1 %vm28_vm0, %v510_v40 }
  0x9c   :  { %v1098_v45 = vpop.permute.xlu0 %1097  ;;  %2136 = vmatmul.mubr.msk.f32.vlgmr.msra.gmra.mxu1 %vm64_vm3, %v2417_v42  ;;  %2144 = vmatprep.subr.msk.mxu1 %vm28_vm0, %v714_v39  ;;  %v2445_v51 = vpop.permute.xlu1 %1491 }
  0x9d   :  { %602 = vmatprep.mubr.f32.mxu1 %v2244_v10  ;;  %2145 = vmatpush1.msk.msra.mxu1 %vm28_vm0, %v708_v43  ;;  %v1110_v52 = vsel %vm1103_vm8, %v1098_v45, %v1096_v29  ;;  %v1104_v60 = vsel %vm1103_vm8, %v1096_v29, %v1098_v45 }
  0x9e   :  { %2154 = vmatprep.subr.msk.mxu1 %vm28_vm0, %v912_v44  ;;  %v2250_v44 = vmov 1  }
  0x9f   :  { %2232 = vset.pattern.permute.xlu1 %v2250_v44  ;;  %2234 = vset.pattern.permute.xlu0 %v2250_v44 }
  0xa0   :  { %v1296_v48 = vpop.permute.xlu0 %1295  ;;  %2137 = vmatmul.mubr.msk.f32.gmra.mxu1 %vm64_vm3, %v2432_v46  ;;  %v2466_v58 = vpop.permute.xlu1 %1689 }
  0xa1   :  { %794 = vmatprep.mubr.f32.mxu1 %v2244_v10  ;;  %v1308_v62 = vsel %vm1301_vm9, %v1296_v48, %v2409_v37  ;;  %v1302_v6 = vsel %vm1301_vm9, %v2409_v37, %v1296_v48 }
  0xa4   :  { %v150_v53 = vpop.permute.xlu0 %149  ;;  %2146 = vmatmul.mubr.msk.f32.vlgmr.msra.gmra.mxu1 %vm64_vm3, %v2442_v49  ;;  %v506_v63 = vpop.permute.xlu1 %505 }
  0xa5   :  { %v153_v54 = vsel %vm151_vm2, %v148_v47, %v150_v53  ;;  %v159_v55 = vsel %vm151_vm2, %v150_v53, %v148_v47  ;;  %800 = vmatprep.mubr.f32.mxu1 %v2244_v10  ;;  %2155 = vmatpush1.msk.msra.mxu1 %vm28_vm0, %v906_v50 }
  0xa6   :  { %2120 = vmatprep.subr.msk.mxu0 %vm28_vm0, %v159_v55  ;;  %2164 = vmatprep.subr.msk.mxu1 %vm28_vm0, %v1110_v52 }
  0xa7   :  { %2121 = vmatpush1.msk.msra.mxu0 %vm28_vm0, %v153_v54 }
  0xa8   :  { %2122 = vmatmul.mubr.msk.f32.vlgmr.msra.gmra.mxu0 %vm64_vm3, %v2371_v16  ;;  %v1494_v57 = vpop.permute.xlu0 %1493  ;;  %2128 = vmatprep.subr.msk.mxu0 %vm28_vm0, %v2302_v4  ;;  %v704_v4 = vpop.permute.xlu1 %703  ;;  %v2544_v16 = vld [vmem:[%s2676_s3 + $0x60] sm:$0xff] }
  0xa9   :  { %326 = vmatprep.mubr.f32.mxu0 %v2244_v10  ;;  %2129 = vmatpush1.msk.msra.mxu0 %vm28_vm0, %v2292_v1  ;;  %v1506_v8 = vsel %vm1499_vm10, %v1494_v57, %v2445_v51  ;;  %v1500_v17 = vsel %vm1499_vm10, %v2445_v51, %v1494_v57  ;;  %v2251_v57 = vmov 1966171168  }
  0xaa   :  { %2147 = vmatmul.mubr.msk.f32.gmra.mxu1 %vm64_vm3, %v2460_v56 }
  0xab   :  { %992 = vmatprep.mubr.f32.mxu1 %v2244_v10 }
  0xac   :  { %2123 = vmatmul.mubr.msk.f32.gmra.mxu0 %vm64_vm3, %v2383_v18  ;;  %v2482_v61 = vpop.permute.xlu0 %1691  ;;  %v902_v12 = vpop.permute.xlu1 %901 }
  0xad   :  { %488 = vmatprep.mubr.f32.mxu0 %v2244_v10  ;;  %v1698_v25 = vsel %vm1697_vm11, %v2466_v58, %v2482_v61 }
  0xae   :  { %2156 = vmatmul.mubr.msk.f32.vlgmr.msra.gmra.mxu1 %vm64_vm3, %v2477_v59 }
  0xaf   :  { %998 = vmatprep.mubr.f32.mxu1 %v2244_v10  ;;  %2165 = vmatpush1.msk.msra.mxu1 %vm28_vm0, %v1104_v60 }
  0xb0   :  { %2130 = vmatmul.mubr.msk.f32.vlgmr.msra.gmra.mxu0 %vm64_vm3, %v2393_v20  ;;  %v508_v1 = vpop.permute.xlu0 %507  ;;  %2174 = vmatprep.subr.msk.mxu1 %vm28_vm0, %v1308_v62  ;;  %v1100_v18 = vpop.permute.xlu1 %1099  ;;  %v1704_v20 = vsel %vm1697_vm11, %v2482_v61, %v2466_v58  ;;  %v1965_v58 = vunpack.c.l.s4 %v2251_v57 }
  0xb1   :  { %494 = vmatprep.mubr.f32.mxu0 %v2244_v10  ;;  %v511_v2 = vsel %vm509_vm6, %v506_v63, %v508_v1  ;;  %v517_v3 = vsel %vm509_vm6, %v508_v1, %v506_v63 }
  0xb2   :  { %2138 = vmatprep.subr.msk.mxu0 %vm28_vm0, %v517_v3  ;;  %2157 = vmatmul.mubr.msk.f32.gmra.mxu1 %vm64_vm3, %v2493_v0 }
  0xb3   :  { %2139 = vmatpush1.msk.msra.mxu0 %vm28_vm0, %v511_v2  ;;  %1190 = vmatprep.mubr.f32.mxu1 %v2244_v10 }
  0xb4   :  { %2131 = vmatmul.mubr.msk.f32.gmra.mxu0 %vm64_vm3, %v2401_v22  ;;  %v706_v7 = vpop.permute.xlu0 %705  ;;  %v1298_v26 = vpop.permute.xlu1 %1297 }
  0xb5   :  { %678 = vmatprep.mubr.f32.mxu0 %v2244_v10  ;;  %v715_v9 = vsel %vm707_vm5, %v706_v7, %v704_v4  ;;  %v709_v11 = vsel %vm707_vm5, %v704_v4, %v706_v7 }
  0xb6   :  { %2148 = vmatprep.subr.msk.mxu0 %vm28_vm0, %v715_v9  ;;  %2166 = vmatmul.mubr.msk.f32.vlgmr.msra.gmra.mxu1 %vm64_vm3, %v2510_v5 }
  0xb7   :  { %1196 = vmatprep.mubr.f32.mxu1 %v2244_v10  ;;  %2175 = vmatpush1.msk.msra.mxu1 %vm28_vm0, %v1302_v6 }
  0xb8   :  { %2140 = vmatmul.mubr.msk.f32.vlgmr.msra.gmra.mxu0 %vm64_vm3, %v2417_v42  ;;  %v904_v14 = vpop.permute.xlu0 %903  ;;  %2184 = vmatprep.subr.msk.mxu1 %vm28_vm0, %v1506_v8  ;;  %v1496_v33 = vpop.permute.xlu1 %1495 }
  0xb9   :  { %684 = vmatprep.mubr.f32.mxu0 %v2244_v10  ;;  %2149 = vmatpush1.msk.msra.mxu0 %vm28_vm0, %v709_v11  ;;  %v913_v15 = vsel %vm905_vm7, %v904_v14, %v902_v12  ;;  %v907_v21 = vsel %vm905_vm7, %v902_v12, %v904_v14 }
  0xba   :  { %2158 = vmatprep.subr.msk.mxu0 %vm28_vm0, %v913_v15  ;;  %2167 = vmatmul.mubr.msk.f32.gmra.mxu1 %vm64_vm3, %v2528_v13 }
  0xbb   :  { %1388 = vmatprep.mubr.f32.mxu1 %v2244_v10 }
  0xbc   :  { %2141 = vmatmul.mubr.msk.f32.gmra.mxu0 %vm64_vm3, %v2432_v46  ;;  %v1102_v19 = vpop.permute.xlu0 %1101  ;;  %v1694_v39 = vpop.permute.xlu1 %1693 }
  0xbd   :  { %876 = vmatprep.mubr.f32.mxu0 %v2244_v10  ;;  %v1111_v22 = vsel %vm1103_vm8, %v1102_v19, %v1100_v18  ;;  %v1105_v29 = vsel %vm1103_vm8, %v1100_v18, %v1102_v19 }
  0xbe   :  { %2176 = vmatmul.mubr.msk.f32.vlgmr.msra.gmra.mxu1 %vm64_vm3, %v2544_v16 }
  0xbf   :  { %1394 = vmatprep.mubr.f32.mxu1 %v2244_v10  ;;  %2185 = vmatpush1.msk.msra.mxu1 %vm28_vm0, %v1500_v17 }
  0xc0   :  { %2150 = vmatmul.mubr.msk.f32.vlgmr.msra.gmra.mxu0 %vm64_vm3, %v2442_v49  ;;  %2194 = vmatprep.subr.msk.mxu1 %vm28_vm0, %v1704_v20  ;;  %v1300_v28 = vpop.permute.xlu0 %1299 }
  0xc1   :  { %882 = vmatprep.mubr.f32.mxu0 %v2244_v10  ;;  %2159 = vmatpush1.msk.msra.mxu0 %vm28_vm0, %v907_v21  ;;  %v1309_v30 = vsel %vm1301_vm9, %v1300_v28, %v1298_v26  ;;  %v1303_v36 = vsel %vm1301_vm9, %v1298_v26, %v1300_v28  ;;  %v2252_v21 = vmov 2  }
  0xc2   :  { %2168 = vmatprep.subr.msk.mxu0 %vm28_vm0, %v1111_v22  ;;  %2177 = vmatmul.mubr.msk.f32.gmra.mxu1 %vm64_vm3, %v2173_v23 }
  0xc3   :  { %1586 = vmatprep.mubr.f32.mxu1 %v2244_v10 }
  0xc4   :  { %2151 = vmatmul.mubr.msk.f32.gmra.mxu0 %vm64_vm3, %v2460_v56  ;;  %v1498_v34 = vpop.permute.xlu0 %1497 }
  0xc5   :  { %1074 = vmatprep.mubr.f32.mxu0 %v2244_v10  ;;  %v1507_v37 = vsel %vm1499_vm10, %v1498_v34, %v1496_v33  ;;  %v1501_v41 = vsel %vm1499_vm10, %v1496_v33, %v1498_v34 }
  0xc6   :  { %2186 = vmatmul.mubr.msk.f32.vlgmr.msra.gmra.mxu1 %vm64_vm3, %v2182_v24 }
  0xc7   :  { %1592 = vmatprep.mubr.f32.mxu1 %v2244_v10  ;;  %2195 = vmatpush1.msk.msra.mxu1 %vm28_vm0, %v1698_v25 }
  0xc8   :  { %2160 = vmatmul.mubr.msk.f32.vlgmr.msra.gmra.mxu0 %vm64_vm3, %v2477_v59  ;;  %2213 = vmatprep.subr.mxu1 %v2244_v10  ;;  %v1696_v40 = vpop.permute.xlu0 %1695  ;;  %v1966_v59 = vunpack.c.0.s8 %v1965_v58 }
  0xc9   :  { %1080 = vmatprep.mubr.f32.mxu0 %v2244_v10  ;;  %2169 = vmatpush1.msk.msra.mxu0 %vm28_vm0, %v1105_v29  ;;  %v1705_v42 = vsel %vm1697_vm11, %v1696_v40, %v1694_v39  ;;  %v1699_v43 = vsel %vm1697_vm11, %v1694_v39, %v1696_v40 }
  0xca   :  { %2178 = vmatprep.subr.msk.mxu0 %vm28_vm0, %v1309_v30  ;;  %2187 = vmatmul.mubr.msk.f32.gmra.mxu1 %vm64_vm3, %v2183_v31  ;;  %v1969_v62 = vsub.s32 %v1966_v59, %v2406_v27 }
  0xcb   :  { %1784 = vmatprep.mubr.f32.mxu1 %v2244_v10 }
  0xcc   :  { %2161 = vmatmul.mubr.msk.f32.gmra.mxu0 %vm64_vm3, %v2493_v0 }
  0xcd   :  { %1272 = vmatprep.mubr.f32.mxu0 %v2244_v10 }
  0xce   :  { %2196 = vmatmul.mubr.msk.f32.vlgmr.msra.gmra.mxu1 %vm64_vm3, %v2192_v32 }
  0xcf   :  { %1790 = vmatprep.mubr.f32.mxu1 %v2244_v10  ;;  %2214 = vmatpush3.msk.msra.mxu1 %vm28_vm0, %v1887_v35 }
  0xd0   :  { %2170 = vmatmul.mubr.msk.f32.vlgmr.msra.gmra.mxu0 %vm64_vm3, %v2510_v5  ;;  %v2648_v5 = vsub.s32 0, %v2406_v27 }
  0xd1   :  { %1278 = vmatprep.mubr.f32.mxu0 %v2244_v10  ;;  %2179 = vmatpush1.msk.msra.mxu0 %vm28_vm0, %v1303_v36 }
  0xd2   :  { %2188 = vmatprep.subr.msk.mxu0 %vm28_vm0, %v1507_v37  ;;  %2197 = vmatmul.mubr.msk.f32.gmra.mxu1 %vm64_vm3, %v2193_v38 }
  0xd3   :  { %2215 = vmatprep.mubr.msk.f32.mxu1 %vm2245_vm1, %v2244_v10 }
  0xd4   :  { %2171 = vmatmul.mubr.msk.f32.gmra.mxu0 %vm64_vm3, %v2528_v13 }
  0xd5   :  { %1470 = vmatprep.mubr.f32.mxu0 %v2244_v10 }
  0xd8   :  { %2180 = vmatmul.mubr.msk.f32.vlgmr.msra.gmra.mxu0 %vm64_vm3, %v2544_v16 }
  0xd9   :  { %1476 = vmatprep.mubr.f32.mxu0 %v2244_v10  ;;  %2189 = vmatpush1.msk.msra.mxu0 %vm28_vm0, %v1501_v41 }
  0xda   :  { %2198 = vmatprep.subr.msk.mxu0 %vm28_vm0, %v1705_v42 }
  0xdc   :  { %2181 = vmatmul.mubr.msk.f32.gmra.mxu0 %vm64_vm3, %v2173_v23  ;;  %v2253_v23 = vmov 0  }
  0xdd   :  { %1668 = vmatprep.mubr.f32.mxu0 %v2244_v10 }
  0xe0   :  { %2190 = vmatmul.mubr.msk.f32.vlgmr.msra.gmra.mxu0 %vm64_vm3, %v2182_v24 }
  0xe1   :  { %1674 = vmatprep.mubr.f32.mxu0 %v2244_v10  ;;  %2199 = vmatpush1.msk.msra.mxu0 %vm28_vm0, %v1699_v43 }
  0xe4   :  { %2191 = vmatmul.mubr.msk.f32.gmra.mxu0 %vm64_vm3, %v2183_v31 }
  0xe5   :  { %1866 = vmatprep.mubr.f32.mxu0 %v2244_v10 }
  0xe8   :  { %2200 = vmatmul.mubr.msk.f32.vlgmr.msra.gmra.mxu0 %vm64_vm3, %v2192_v32 }
  0xe9   :  { %1872 = vmatprep.mubr.f32.mxu0 %v2244_v10  ;;  %v2111_v10 = vld [vmem:[%s2678_s2] ss:$0 sm:$0xff] }
  0xec   :  { %2201 = vmatmul.mubr.msk.f32.gmra.mxu0 %vm64_vm3, %v2193_v38 }
 0x13c   :  { %v240_v45 = vpop.f32.mrf.mxu1 }
 0x13e   :  { %v242_v46 = vpop.f32.mrf.mxu1 }
 0x140   :  { %v246_v47 = vpop.f32.mrf.mxu1 }
 0x142   :  { %v248_v48 = vpop.f32.mrf.mxu1 }
 0x144   :  { %v409_v49 = vpop.f32.mrf.mxu1 }
 0x145   :  { %v410_v50 = vadd.f32 %v409_v49, %v240_v45 }
 0x146   :  { %v411_v51 = vpop.f32.mrf.mxu1 }
 0x147   :  { %v412_v52 = vadd.f32 %v411_v51, %v242_v46 }
 0x148   :  { %v415_v53 = vpop.f32.mrf.mxu1 }
 0x149   :  { %v416_v54 = vadd.f32 %v415_v53, %v246_v47 }
 0x14a   :  { %v417_v55 = vpop.f32.mrf.mxu1 }
 0x14b   :  { %v418_v56 = vadd.f32 %v417_v55, %v248_v48 }
 0x15a   :  { %v136_v60 = vpop.f32.mrf.mxu0 }
 0x15b   :  { %v137_v61 = vadd.f32 %v2111_v10, %v136_v60 }
 0x15c   :  { %v2212_v63 = vpop.f32.mrf.mxu0  ;;  %v598_v0 = vpop.f32.mrf.mxu1 }
 0x15d   :  { %v140_v1 = vmax.f32 %v137_v61, 0.0  ;;  %v691_v2 = vadd.f32 %v598_v0, %v410_v50 }
 0x15e   :  { %v600_v3 = vpop.f32.mrf.mxu1 }
 0x15f   :  { %v1970_v4 = vrot.slane %v140_v1, %v1969_v62  ;;  %2216 = vmatmul.mubr.msk.f32.vlgmr.msra.gmra.mxu1 %vm64_vm3, %v140_v1  ;;  %v692_v6 = vadd.f32 %v600_v3, %v412_v52 }
 0x160   :  { %v604_v7 = vpop.f32.mrf.mxu1 }
 0x161   :  { %v1971_v8 = vcombine.high %v1970_v4, %v1970_v4  ;;  %v1978_v9 = vrot.slane %v1970_v4, %v1969_v62  ;;  %v693_v11 = vadd.f32 %v604_v7, %v416_v54 }
 0x162   :  { %v606_v12 = vpop.f32.mrf.mxu1 }
 0x163   :  { %v1989_v13 = vrot.slane %v1978_v9, %v2648_v5  ;;  %v1985_v14 = vrot.slane %v1971_v8, %v1969_v62  ;;  %v694_v15 = vadd.f32 %v606_v12, %v418_v56 }
 0x164   :  { %v796_v16 = vpop.f32.mrf.mxu1 }
 0x165   :  { %2007 = vperm.xlu1 %2232, %v1989_v13   ;;  %v1993_v17 = vrot.slane %v1985_v14, %v2648_v5  ;;  %v889_v18 = vadd.f32 %v796_v16, %v691_v2 }
 0x166   :  { %v798_v19 = vpop.f32.mrf.mxu1 }
 0x167   :  { %2011 = vperm.xlu0 %2234, %v1993_v17   ;;  %v890_v20 = vadd.f32 %v798_v19, %v692_v6 }
 0x169   :  { %2233 = vset.pattern.permute.xlu1 %v2252_v21 }
 0x16a   :  { %2035 = vperm.xlu1 %2233, %v1989_v13   ;;  %v802_v22 = vpop.f32.mrf.mxu1 }
 0x16b   :  { %2235 = vset.pattern.permute.xlu0 %v2253_v23  ;;  %v891_v24 = vadd.f32 %v802_v22, %v693_v11 }
 0x16c   :  { %1995 = vperm.xlu0 %2235, %v1989_v13   ;;  %v804_v25 = vpop.f32.mrf.mxu1 }
 0x16d   :  { %v892_v26 = vadd.f32 %v804_v25, %v694_v15 }
 0x16e   :  { %2039 = vperm.xlu1 %2233, %v1993_v17   ;;  %v994_v28 = vpop.f32.mrf.mxu1 }
 0x16f   :  { %v1087_v29 = vadd.f32 %v994_v28, %v889_v18 }
 0x170   :  { %v996_v30 = vpop.f32.mrf.mxu1  ;;  %2237 = vset.pattern.permute.xlu0 %v2252_v21 }
 0x171   :  { %v1088_v31 = vadd.f32 %v996_v30, %v890_v20  ;;  %v322_v30 = vpop.f32.mrf.mxu0 }
 0x172   :  { %2236 = vset.pattern.permute.xlu1 %v2253_v23  ;;  %v1000_v32 = vpop.f32.mrf.mxu1 }
 0x173   :  { %1999 = vperm.xlu1 %2236, %v1993_v17   ;;  %v1089_v33 = vadd.f32 %v1000_v32, %v891_v24 }
 0x174   :  { %v1002_v34 = vpop.f32.mrf.mxu1 }
 0x175   :  { %v1090_v35 = vadd.f32 %v1002_v34, %v892_v26 }
 0x176   :  { %v1192_v36 = vpop.f32.mrf.mxu1 }
 0x177   :  { %v1285_v37 = vadd.f32 %v1192_v36, %v1087_v29 }
 0x178   :  { %v1194_v38 = vpop.f32.mrf.mxu1 }
 0x179   :  { %v1286_v39 = vadd.f32 %v1194_v38, %v1088_v31  ;;  %v324_v31 = vpop.f32.mrf.mxu0 }
 0x17a   :  { %v1198_v40 = vpop.f32.mrf.mxu1 }
 0x17b   :  { %v1287_v41 = vadd.f32 %v1198_v40, %v1089_v33  ;;  %v328_v32 = vpop.f32.mrf.mxu0 }
 0x17c   :  { %v1200_v42 = vpop.f32.mrf.mxu1 }
 0x17d   :  { %v1288_v43 = vadd.f32 %v1200_v42, %v1090_v35  ;;  %v330_v33 = vpop.f32.mrf.mxu0 }
 0x17e   :  { %v1390_v44 = vpop.f32.mrf.mxu1 }
 0x17f   :  { %v1483_v45 = vadd.f32 %v1390_v44, %v1285_v37  ;;  %v490_v34 = vpop.f32.mrf.mxu0 }
 0x180   :  { %v1392_v46 = vpop.f32.mrf.mxu1 }
 0x181   :  { %v1484_v47 = vadd.f32 %v1392_v46, %v1286_v39  ;;  %v492_v35 = vpop.f32.mrf.mxu0  ;;  %v2088_v39 = vsub.s32 1, %v2406_v27 }
 0x182   :  { %v1396_v48 = vpop.f32.mrf.mxu1 }
 0x183   :  { %v1485_v49 = vadd.f32 %v1396_v48, %v1287_v41  ;;  %v496_v36 = vpop.f32.mrf.mxu0 }
 0x184   :  { %v1398_v50 = vpop.f32.mrf.mxu1 }
 0x185   :  { %v1486_v51 = vadd.f32 %v1398_v50, %v1288_v43  ;;  %v498_v37 = vpop.f32.mrf.mxu0 }
 0x186   :  { %v1588_v52 = vpop.f32.mrf.mxu1 }
 0x187   :  { %v1681_v53 = vadd.f32 %v1588_v52, %v1483_v45  ;;  %v680_v38 = vpop.f32.mrf.mxu0 }
 0x188   :  { %v1590_v54 = vpop.f32.mrf.mxu1 }
 0x189   :  { %v1682_v55 = vadd.f32 %v1590_v54, %v1484_v47  ;;  %v682_v40 = vpop.f32.mrf.mxu0 }
 0x18a   :  { %v1594_v56 = vpop.f32.mrf.mxu1 }
 0x18b   :  { %v1683_v57 = vadd.f32 %v1594_v56, %v1485_v49  ;;  %v686_v44 = vpop.f32.mrf.mxu0 }
 0x18c   :  { %v1596_v58 = vpop.f32.mrf.mxu1 }
 0x18d   :  { %v1684_v59 = vadd.f32 %v1596_v58, %v1486_v51  ;;  %v688_v46 = vpop.f32.mrf.mxu0 }
 0x18e   :  { %v1786_v10 = vpop.f32.mrf.mxu1 }
 0x18f   :  { %v1879_v60 = vadd.f32 %v1786_v10, %v1681_v53  ;;  %v878_v47 = vpop.f32.mrf.mxu0 }
 0x190   :  { %v1788_v61 = vpop.f32.mrf.mxu1 }
 0x191   :  { %v1880_v62 = vadd.f32 %v1788_v61, %v1682_v55  ;;  %v880_v48 = vpop.f32.mrf.mxu0  ;;  %v493_v61 = vadd.f32 %v492_v35, %v324_v31 }
 0x192   :  { %v1792_v63 = vpop.f32.mrf.mxu1 }
 0x193   :  { %v1881_v0 = vadd.f32 %v1792_v63, %v1683_v57  ;;  %v884_v49 = vpop.f32.mrf.mxu0  ;;  %v497_v63 = vadd.f32 %v496_v36, %v328_v32 }
 0x194   :  { %v1794_v1 = vpop.f32.mrf.mxu1 }
 0x195   :  { %v1882_v4 = vadd.f32 %v1794_v1, %v1684_v59  ;;  %v886_v50 = vpop.f32.mrf.mxu0 }
 0x197   :  { %v1076_v51 = vpop.f32.mrf.mxu0 }
 0x199   :  { %v1078_v52 = vpop.f32.mrf.mxu0 }
 0x19b   :  { %v1082_v53 = vpop.f32.mrf.mxu0 }
 0x19d   :  { %v1084_v54 = vpop.f32.mrf.mxu0 }
 0x19f   :  { %v1274_v55 = vpop.f32.mrf.mxu0 }
 0x1a1   :  { %v1276_v27 = vpop.f32.mrf.mxu0 }
 0x1a3   :  { %v1280_v56 = vpop.f32.mrf.mxu0 }
 0x1a5   :  { %v1282_v57 = vpop.f32.mrf.mxu0 }
 0x1a7   :  { %v1472_v58 = vpop.f32.mrf.mxu0 }
 0x1a9   :  { %v1474_v59 = vpop.f32.mrf.mxu0 }
 0x1e0   :  { %v2008_v2 = vpop.permute.xlu1 %2007 }
 0x1e1   :  { %v2014_v6 = vmul.f32 %v2008_v2, %v1879_v60  ;;  %v2015_v7 = vmul.f32 %v2008_v2, %v1880_v62  ;;  %v696_v2 = vadd.f32 %v682_v40, %v493_v61 }
 0x1e2   :  { %v2652_v3 = vpop.permute.xlu0 %2011 }
 0x1e3   :  { %v2022_v19 = vrot.slane %v2014_v6, 3  ;;  %v2023_v20 = vrot.slane %v2015_v7, 3  ;;  %v697_v6 = vadd.f32 %v686_v44, %v497_v63 }
 0x1e5   :  { %v2036_v8 = vpop.permute.xlu1 %2035 }
 0x1e6   :  { %v2042_v9 = vmul.f32 %v2036_v8, %v1879_v60  ;;  %v2043_v11 = vmul.f32 %v2036_v8, %v1880_v62  ;;  %v2044_v12 = vmul.f32 %v2036_v8, %v1881_v0  ;;  %v2045_v13 = vmul.f32 %v2036_v8, %v1882_v4 }
 0x1e7   :  { %v1996_v14 = vpop.permute.xlu0 %1995  ;;  %v499_v0 = vadd.f32 %v498_v37, %v330_v33 }
 0x1e8   :  { %v2059_v15 = vrot.slane %v2042_v9, 6  ;;  %v2060_v16 = vrot.slane %v2044_v12, 6  ;;  %v2062_v17 = vrot.slane %v2043_v11, 6  ;;  %v2063_v18 = vrot.slane %v2045_v13, 6 }
 0x1e9   :  { %v2002_v21 = vmul.f32 %v1996_v14, %v1879_v60  ;;  %v2003_v22 = vmul.f32 %v1996_v14, %v1880_v62  ;;  %v491_v60 = vadd.f32 %v490_v34, %v322_v30  ;;  %v698_v7 = vadd.f32 %v688_v46, %v499_v0  ;;  %v2040_v37 = vpop.permute.xlu1 %2039 }
 0x1ea   :  { %v2061_v25 = vsel %vm2058_vm12, %v2059_v15, %v2060_v16  ;;  %v2064_v26 = vsel %vm2058_vm12, %v2062_v17, %v2063_v18  ;;  %v894_v9 = vadd.f32 %v880_v48, %v696_v2  ;;  %v895_v12 = vadd.f32 %v884_v49, %v697_v6 }
 0x1eb   :  { %v2030_v23 = vadd.f32 %v2022_v19, %v2002_v21  ;;  %v2031_v24 = vadd.f32 %v2023_v20, %v2003_v22  ;;  %v695_v1 = vadd.f32 %v680_v38, %v491_v60  ;;  %v896_v13 = vadd.f32 %v886_v50, %v698_v7 }
 0x1ec   :  { %v1092_v15 = vadd.f32 %v1078_v52, %v894_v9  ;;  %v1093_v17 = vadd.f32 %v1082_v53, %v895_v12 }
 0x1ed   :  { %v2656_v28 = vadd.f32 %v2061_v25, %v2030_v23  ;;  %v2658_v29 = vadd.f32 %v2064_v26, %v2031_v24  ;;  %v893_v8 = vadd.f32 %v878_v47, %v695_v1  ;;  %v1094_v18 = vadd.f32 %v1084_v54, %v896_v13 }
 0x1ee   :  { %v1290_v20 = vadd.f32 %v1276_v27, %v1092_v15  ;;  %v1291_v22 = vadd.f32 %v1280_v56, %v1093_v17 }
 0x1ef   :  { %v1091_v14 = vadd.f32 %v1076_v51, %v893_v8  ;;  %v1292_v23 = vadd.f32 %v1282_v57, %v1094_v18 }
 0x1f0   :  { %v1488_v25 = vadd.f32 %v1474_v59, %v1290_v20 }
 0x1f1   :  { %v1289_v19 = vadd.f32 %v1274_v55, %v1091_v14 }
 0x1f3   :  { %v1487_v24 = vadd.f32 %v1472_v58, %v1289_v19 }
 0x21f   :  { %v1960_v41 = vpop.f32.mrf.mxu1 }
 0x220   :  { %v2089_v42 = vrot.slane %v1960_v41, %v2088_v39  ;;  %v2082_v43 = vrot.slane %v1960_v41, %v2648_v5  ;;  %v1478_v5 = vpop.f32.mrf.mxu0 }
 0x221   :  { %v2217_v45 = vpop.f32.mrf.mxu1  ;;  %v1489_v30 = vadd.f32 %v1478_v5, %v1291_v22 }
 0x222   :  { %2091 = vbcast.lane.b32.xlu0 %v2089_v42, 256  ;;  %2084 = vbcast.lane.b32.xlu1 %v2082_v43, 256  ;;  %v1480_v10 = vpop.f32.mrf.mxu0  ;;  %v2000_v43 = vpop.permute.xlu1 %1999 }
 0x223   :  { %v1490_v31 = vadd.f32 %v1480_v10, %v1292_v23 }
 0x224   :  { %v1670_v62 = vpop.f32.mrf.mxu0 }
 0x225   :  { %v1685_v33 = vadd.f32 %v1670_v62, %v1487_v24 }
 0x226   :  { %v1672_v4 = vpop.f32.mrf.mxu0 }
 0x227   :  { %v1686_v34 = vadd.f32 %v1672_v4, %v1488_v25 }
 0x228   :  { %v1676_v11 = vpop.f32.mrf.mxu0 }
 0x229   :  { %v1687_v35 = vadd.f32 %v1676_v11, %v1489_v30 }
 0x22a   :  { %v1678_v16 = vpop.f32.mrf.mxu0 }
 0x22b   :  { %v1688_v36 = vadd.f32 %v1678_v16, %v1490_v31 }
 0x22c   :  { %v1868_v21 = vpop.f32.mrf.mxu0 }
 0x22d   :  { %v1883_v39 = vadd.f32 %v1868_v21, %v1685_v33 }
 0x22e   :  { %v1870_v26 = vpop.f32.mrf.mxu0 }
 0x22f   :  { %v1884_v40 = vadd.f32 %v1870_v26, %v1686_v34  ;;  %v2016_v44 = vmul.f32 %v2652_v3, %v1883_v39  ;;  %v2046_v46 = vmul.f32 %v2040_v37, %v1883_v39  ;;  %v2004_v50 = vmul.f32 %v2000_v43, %v1883_v39 }
 0x230   :  { %v1874_v32 = vpop.f32.mrf.mxu0 }
 0x231   :  { %v1885_v41 = vadd.f32 %v1874_v32, %v1687_v35  ;;  %v2017_v45 = vmul.f32 %v2652_v3, %v1884_v40  ;;  %v2047_v47 = vmul.f32 %v2040_v37, %v1884_v40  ;;  %v2005_v51 = vmul.f32 %v2000_v43, %v1884_v40 }
 0x232   :  { %v1876_v38 = vpop.f32.mrf.mxu0  ;;  %v2024_v52 = vrot.slane %v2016_v44, 3  ;;  %v2065_v54 = vrot.slane %v2046_v46, 6 }
 0x233   :  { %v1886_v42 = vadd.f32 %v1876_v38, %v1688_v36  ;;  %v2048_v48 = vmul.f32 %v2040_v37, %v1885_v41  ;;  %v2025_v53 = vrot.slane %v2017_v45, 3  ;;  %v2068_v27 = vrot.slane %v2047_v47, 6 }
 0x234   :  { %v2032_v57 = vadd.f32 %v2024_v52, %v2004_v50 }
 0x235   :  { %v2049_v49 = vmul.f32 %v2040_v37, %v1886_v42  ;;  %v2066_v55 = vrot.slane %v2048_v48, 6  ;;  %v2033_v58 = vadd.f32 %v2025_v53, %v2005_v51 }
 0x237   :  { %v2069_v56 = vrot.slane %v2049_v49, 6  ;;  %v2067_v59 = vsel %vm2058_vm12, %v2065_v54, %v2066_v55 }
 0x238   :  { %v2077_v10 = vadd.f32 %v2067_v59, %v2032_v57 }
 0x239   :  { %v2070_v5 = vsel %vm2058_vm12, %v2068_v27, %v2069_v56 }
 0x23a   :  { %v2078_v3 = vadd.f32 %v2070_v5, %v2033_v58 }
 0x294   :  { %v2085_v60 = vpop.permute.xlu1 %2084  ;;  %v2092_v61 = vpop.permute.xlu0 %2091 }
 0x295   :  { %v2093_v62 = vadd.f32 %v2085_v60, %v2656_v28  ;;  %v2094_v63 = vadd.f32 %v2085_v60, %v2658_v29  ;;  %v2095_v0 = vadd.f32 %v2092_v61, %v2077_v10  ;;  %v2096_v1 = vadd.f32 %v2092_v61, %v2078_v3 }
 0x297   :  { %v2101_v2 = vcombine.low %v2093_v62, %v2094_v63  ;;  %v2102_v4 = vcombine.low %v2095_v0, %v2096_v1 }
 0x299   :  { %2105 = vst [vmem:[%s2679_s5] sm:$0x77] %v2101_v2  ;;  %2106 = vst [vmem:[%s2679_s5 + $0x8] sm:$0x77] %v2102_v4 }

</bundles_post_ra>
